<compile_context>
chip_gen: v7x
topology: tpu7x:2x2x1
jax: 0.10.0
libtpu: 0.0.40
codegen_flags: <defaults>
</compile_context>

<pallas_src>
import jax
import jax.numpy as jnp
from jax.experimental import pallas as pl
from jax.experimental.pallas import tpu as pltpu


def _round_up(v: int, m: int) -> int:
    return ((v + m - 1) // m) * m


def _mlp1_kernel(xT_ref, w1_ref, b1_ref, w2_ref, b2_ref, o_ref):
    # First layer on the MXU, already in transposed orientation:
    #   hT[j, r] = sum_d w1[j, d] * xT[d, r]            -> (H_pad, TM)
    # Hidden units live on sublanes, batch rows on lanes, so the final result row is
    # lane-dense.
    hT = jnp.dot(w1_ref[...], xT_ref[...], preferred_element_type=jnp.float32)
    hT = jnp.tanh(hT + b1_ref[...])                      # EUP tanh, (H_pad,1) bias bcast

    # Second layer (output width 1): VPU broadcast-multiply + sublane (XLU) reduction
    # instead of a width-1 MXU matmul.  b2 comes from SMEM as a true scalar.
    y = jnp.sum(hT * w2_ref[...], axis=0, keepdims=True) + b2_ref[0]   # (1, TM)
    o_ref[...] = y.astype(o_ref.dtype)                   # lane-dense unmasked stores


def mlp1_forward(x, w1, b1, w2, b2, *, tm=None):
    """x: (N, D) f32; w1: (H, D); b1: (H,); w2: (1, H); b2: (1,). Returns (N, 1) f32."""
    N, D = x.shape
    H = w1.shape[0]
    f32 = jnp.float32

    # H sits on the SUBLANE axis of w1/b1/w2/hT -> only multiple-of-8 padding needed.
    H_pad = _round_up(H, 8)

    # Batch tile = lanes of the streamed xT block and of the output row.  Large tiles
    # amortize the fixed per-grid-step overhead; 16K rows keeps the double-buffered
    # (D, TM) x tile + the (H_pad, TM) hT temp well inside VMEM on every generation,
    # and still yields grid >= 2 (dual-TC sharding on v7x) once N > 16K.
    if tm is None:
        tm = 16384
    tm = max(128, _round_up(tm, 128))
    tm = min(tm, _round_up(max(N, 1), 128))   # never bigger than the padded batch
    n_pad = _round_up(max(N, 1), tm)
    grid = n_pad // tm

    # Stream x lane-dense: one transpose in the wrapper; the zero-column pad for the
    # ragged last tile fuses with it into the same XLA copy pass (no extra HBM pass).
    xT = x.astype(f32).T                                        # (D, N)
    if n_pad != N:
        xT = jnp.pad(xT, ((0, 0), (0, n_pad - N)))              # padded cols sliced off

    w1_p = jnp.pad(w1.astype(f32), ((0, H_pad - H), (0, 0)))               # (H_pad, D)
    b1_c = jnp.pad(b1.astype(f32), (0, H_pad - H)).reshape(H_pad, 1)       # (H_pad, 1)
    w2_c = jnp.pad(w2.astype(f32), ((0, 0), (0, H_pad - H))).reshape(H_pad, 1)
    b2_s = b2.astype(f32).reshape(1)                                       # SMEM scalar

    cost = pl.CostEstimate(
        flops=2 * n_pad * H_pad * (D + 1),
        transcendentals=n_pad * H_pad,
        bytes_accessed=4 * (n_pad * D + n_pad + H_pad * (D + 2) + 1),
    )

    out = pl.pallas_call(
        _mlp1_kernel,
        out_shape=jax.ShapeDtypeStruct((1, n_pad), f32),
        grid=(grid,),
        in_specs=[
            pl.BlockSpec((D, tm), lambda i: (0, i)),            # xT: streamed, lane-dense
            pl.BlockSpec((H_pad, D), lambda i: (0, 0)),         # w1: resident in VMEM
            pl.BlockSpec((H_pad, 1), lambda i: (0, 0)),         # b1: resident
            pl.BlockSpec((H_pad, 1), lambda i: (0, 0)),         # w2: resident
            pl.BlockSpec(memory_space=pltpu.MemorySpace.SMEM),  # b2: scalar in SMEM
        ],
        out_specs=pl.BlockSpec((1, tm), lambda i: (0, i)),
        compiler_params=pltpu.CompilerParams(
            dimension_semantics=("parallel",),
            vmem_limit_bytes=48 * 1024 * 1024,
        ),
        cost_estimate=cost,
    )(xT, w1_p, b1_c, w2_c, b2_s)

    return out[0, :N, None]                                     # (N, 1)


def mlp1_reference(x, w1, b1, w2, b2):
    # Pure-JAX reference matching torch.nn.Linear semantics (y = x @ W.T + b).
    h = jnp.tanh(x @ w1.T + b1)
    return h @ w2.T + b2


if __name__ == "__main__":
    key = jax.random.PRNGKey(0)
    k_x, k_w1, k_b1, k_w2, k_b2, k_x2 = jax.random.split(key, 6)

    # Small shapes consistent with MLP1's forward: (N, input_size) -> (N, 1).
    N = 8
    input_size = 4
    hidden_size = 32  # module default is 100; small shape for the demo

    x = jax.random.normal(k_x, (N, input_size), dtype=jnp.float32)
    w1 = jax.random.normal(k_w1, (hidden_size, input_size), dtype=jnp.float32) * 0.5
    b1 = jax.random.normal(k_b1, (hidden_size,), dtype=jnp.float32) * 0.1
    w2 = jax.random.normal(k_w2, (1, hidden_size), dtype=jnp.float32) * 0.5
    b2 = jax.random.normal(k_b2, (1,), dtype=jnp.float32) * 0.1

    # Check 1: tiny batch, single grid step, default tile selection.
    y = mlp1_forward(x, w1, b1, w2, b2)
    jax.block_until_ready(y)
    y_ref = mlp1_reference(x, w1, b1, w2, b2)
    assert y.shape == (N, 1), y.shape
    assert jnp.allclose(y, y_ref, atol=1e-4, rtol=1e-4), "mismatch vs reference (small)"

    # Check 2: multiple grid steps + ragged last tile with a forced small tile size.
    N2 = 300
    x2 = jax.random.normal(k_x2, (N2, input_size), dtype=jnp.float32)
    y2 = mlp1_forward(x2, w1, b1, w2, b2, tm=128)   # grid = 3, last tile padded
    jax.block_until_ready(y2)
    y2_ref = mlp1_reference(x2, w1, b1, w2, b2)
    assert y2.shape == (N2, 1), y2.shape
    assert jnp.allclose(y2, y2_ref, atol=1e-4, rtol=1e-4), "mismatch vs reference (grid)"

    # Check 3: same batch through the default (large-tile) path.
    y3 = mlp1_forward(x2, w1, b1, w2, b2)
    jax.block_until_ready(y3)
    assert jnp.allclose(y3, y2_ref, atol=1e-4, rtol=1e-4), "mismatch vs reference (default tm)"

    print("KERNEL_OK")
</pallas_src>

<mosaic_0001>
module attributes {stable_mosaic.version = 11 : i64} {
  func.func @_mlp1_kernel(%arg0: i32, %arg1: memref<4x128xf32, #tpu.memory_space<vmem>>, %arg2: memref<32x4xf32, #tpu.memory_space<vmem>>, %arg3: memref<32x1xf32, #tpu.memory_space<vmem>>, %arg4: memref<32x1xf32, #tpu.memory_space<vmem>>, %arg5: memref<1xf32, #tpu.memory_space<smem>>, %arg6: memref<1x128xf32, #tpu.memory_space<vmem>>) attributes {dimension_semantics = [#tpu.dimension_semantics<parallel>], iteration_bounds = array<i64: 1>, scalar_prefetch = 0 : i64, scratch_operands = 0 : i64, tpu.core_type = #tpu.core_type<tc>, window_params = [{transform_indices = @transform_0, window_bounds = array<i64: 4, 128>}, {pipeline_mode = #tpu.pipeline_mode<synchronous>, transform_indices = @transform_1, window_bounds = array<i64: 32, 4>}, {pipeline_mode = #tpu.pipeline_mode<synchronous>, transform_indices = @transform_2, window_bounds = array<i64: 32, 1>}, {pipeline_mode = #tpu.pipeline_mode<synchronous>, transform_indices = @transform_3, window_bounds = array<i64: 32, 1>}, {transform_indices = @transform_4, window_bounds = array<i64: 1>}, {transform_indices = @transform_5, window_bounds = array<i64: 1, 128>}]} {
    %c0 = arith.constant 0 : index
    %c0_0 = arith.constant 0 : index
    %0 = vector.load %arg2[%c0, %c0_0] : memref<32x4xf32, #tpu.memory_space<vmem>>, vector<32x4xf32>
    %c0_1 = arith.constant 0 : index
    %c0_2 = arith.constant 0 : index
    %1 = vector.load %arg1[%c0_1, %c0_2] : memref<4x128xf32, #tpu.memory_space<vmem>>, vector<4x128xf32>
    %cst = arith.constant dense<0.000000e+00> : vector<32x128xf32>
    %2 = tpu.matmul %0, %1, %cst {dimension_numbers = #tpu.dot_dimension_numbers<[1], [0], [0], [1], [0, 0, 1, 1], [], []>} : vector<32x4xf32>, vector<4x128xf32>, vector<32x128xf32> -> vector<32x128xf32>
    %c0_3 = arith.constant 0 : index
    %c0_4 = arith.constant 0 : index
    %3 = vector.load %arg3[%c0_3, %c0_4] : memref<32x1xf32, #tpu.memory_space<vmem>>, vector<32x1xf32>
    %4 = vector.broadcast %3 : vector<32x1xf32> to vector<32x128xf32>
    %5 = arith.addf %2, %4 : vector<32x128xf32>
    %6 = math.tanh %5 : vector<32x128xf32>
    %c0_5 = arith.constant 0 : index
    %c0_6 = arith.constant 0 : index
    %7 = vector.load %arg4[%c0_5, %c0_6] : memref<32x1xf32, #tpu.memory_space<vmem>>, vector<32x1xf32>
    %8 = vector.broadcast %7 : vector<32x1xf32> to vector<32x128xf32>
    %9 = arith.mulf %6, %8 : vector<32x128xf32>
    %cst_7 = arith.constant dense<0.000000e+00> : vector<128xf32>
    %10 = vector.multi_reduction <add>, %9, %cst_7 [0] : vector<32x128xf32> to vector<128xf32>
    %11 = vector.shape_cast %10 : vector<128xf32> to vector<1x128xf32>
    %c0_8 = arith.constant 0 : index
    %12 = memref.load %arg5[%c0_8] : memref<1xf32, #tpu.memory_space<smem>>
    %13 = vector.broadcast %12 : f32 to vector<1x128xf32>
    %14 = arith.addf %11, %13 : vector<1x128xf32>
    %c0_9 = arith.constant 0 : index
    %c0_10 = arith.constant 0 : index
    %15 = vector.load %arg6[%c0_9, %c0_10] : memref<1x128xf32, #tpu.memory_space<vmem>>, vector<1x128xf32>
    tpu.vector_store %arg6[%c0_9, %c0_10], %14 {strides = array<i32>} : memref<1x128xf32, #tpu.memory_space<vmem>>, vector<1x128xf32>,
    return
  }
  func.func @transform_0(%arg0: i32) -> (i32, i32) {
    %c0_i32 = arith.constant 0 : i32
    %c0_i32_0 = arith.constant 0 : i32
    return %c0_i32, %arg0 : i32, i32
  }
  func.func @transform_1(%arg0: i32) -> (i32, i32) {
    %c0_i32 = arith.constant 0 : i32
    %c0_i32_0 = arith.constant 0 : i32
    %c0_i32_1 = arith.constant 0 : i32
    return %c0_i32, %c0_i32_0 : i32, i32
  }
  func.func @transform_2(%arg0: i32) -> (i32, i32) {
    %c0_i32 = arith.constant 0 : i32
    %c0_i32_0 = arith.constant 0 : i32
    %c0_i32_1 = arith.constant 0 : i32
    return %c0_i32, %c0_i32_0 : i32, i32
  }
  func.func @transform_3(%arg0: i32) -> (i32, i32) {
    %c0_i32 = arith.constant 0 : i32
    %c0_i32_0 = arith.constant 0 : i32
    %c0_i32_1 = arith.constant 0 : i32
    return %c0_i32, %c0_i32_0 : i32, i32
  }
  func.func @transform_4(%arg0: i32) -> i32 {
    %c0_i32 = arith.constant 0 : i32
    %c0_i32_0 = arith.constant 0 : i32
    return %c0_i32 : i32
  }
  func.func @transform_5(%arg0: i32) -> (i32, i32) {
    %c0_i32 = arith.constant 0 : i32
    %c0_i32_0 = arith.constant 0 : i32
    return %c0_i32, %arg0 : i32, i32
  }
}

</mosaic_0001>

<bundles_post_ra>
// kernel: tpu_custom_call.1
= control target key start
LH: loop header
LB: loop body
LE: loop exit
PB: predicated region body
PF: predicated region fallthrough
CT: control target
= control target key end

     0   :  { %vm64_vm0 = vcmask 1043456   ;;  %vm51_vm1 = vcmask 31744   ;;  %s354_s0 = inlined_call_operand.vmem [shape: f32[4,128], index: 0, kind: input, shape index: {}]   ;;  %s355_s1 = inlined_call_operand.vmem [shape: f32[32,4], index: 1, kind: input, shape index: {}]   ;;  %s356_s2 = inlined_call_operand.vmem [shape: f32[32,1], index: 2, kind: input, shape index: {}]   ;;  %s357_s3 = inlined_call_operand.vmem [shape: f32[32,1], index: 3, kind: input, shape index: {}]   ;;  %s358_s4 = inlined_call_operand.<no memory space> [shape: f32[1], index: 4, kind: input, shape index: {}]   ;;  %s359_s5 = inlined_call_operand.hbm [shape: f32[1,128], index: 5, kind: output, shape index: {}]  }
   0x1   :  { %v26_v0 = vld [vmem:[%s354_s0] sm:$0xf]  ;;  %v24_v2 = vld [vmem:[%s355_s1 + $0x10] sm:$0xff]  ;;  %v23_v3 = vld [vmem:[%s355_s1 + $0x8] sm:$0xff] }
   0x2   :  { %v22_v1 = vld [vmem:[%s355_s1] sm:$0xff]  ;;  %222 = vmatprep.subr.msk.mxu0 %vm64_vm0, %v26_v0  ;;  %230 = vmatprep.subr.msk.mxu1 %vm64_vm0, %v26_v0  ;;  %v25_v4 = vld [vmem:[%s355_s1 + $0x18] sm:$0xff]  ;;  %v29_v6 = vld [vmem:[%s356_s2 + $0x10] sm:$0xff] }
   0x3   :  { %223 = vmatpush3.msk.msra.mxu0 %vm64_vm0, %v26_v0  ;;  %231 = vmatpush3.msk.msra.mxu1 %vm64_vm0, %v26_v0  ;;  %v27_v5 = vld [vmem:[%s356_s2] sm:$0xff] }
   0x4   :  { %224 = vmatprep.mubr.msk.f32.mxu0 %vm51_vm1, %v22_v1  ;;  %227 = vmatprep.mubr.msk.f32.mxu1 %vm51_vm1, %v24_v2 }
   0x5   :  { %225 = vmatmul.mubr.msk.f32.vlgmr.msra.gmra.mrb[0].mxu0 %vm51_vm1, %v23_v3  ;;  %228 = vmatmul.mubr.msk.f32.vlgmr.msra.gmra.mrb[0].mxu1 %vm51_vm1, %v25_v4 }
   0x6   :  { %11 = vsyncpa [#allocation4], 0  ;;  %v268_v7 = vmov 0   ;;  %v28_v8 = vld [vmem:[%s356_s2 + $0x8] sm:$0xff]  ;;  %v30_v9 = vld [vmem:[%s356_s2 + $0x18] sm:$0xff]  ;;  %v195_v46 = vstv %s358_s4  ;;  %s269_s17 = smov [#allocation3]  }
   0x7   :  { %234 = vset.pattern.permute.xlu0 %v268_v7  ;;  %235 = vset.pattern.permute.xlu1 %v268_v7  ;;  %v157_v10 = vld [vmem:[%s357_s3] sm:$0xff]  ;;  %v158_v11 = vld [vmem:[%s357_s3 + $0x8] sm:$0xff]  ;;  %v159_v12 = vld [vmem:[%s357_s3 + $0x10] sm:$0xff]  ;;  %s204_s18 = sshll.u32 %s269_s17, 4  ;;  %s205_s18 = int_to_ptr.vmem [resolvable:$true] %s204_s18 }
   0x8   :  { %33 = vperm.xlu0 %234, %v27_v5   ;;  %43 = vperm.xlu1 %235, %v29_v6   ;;  %v160_v13 = vld [vmem:[%s357_s3 + $0x18] sm:$0xff]  ;;  %s244_s19 = scalar_lea.vmem %s205_s18, 16  ;;  %s248_s20 = scalar_lea.vmem %s205_s18, 32 }
   0x9   :  { %p245_p0 = scmp.ne.s32.totalorder %s205_s18, %s244_s19  ;;  %p249_p1 = scmp.lt.s32.totalorder %s205_s18, %s205_s18 }
   0xa   :  { %p250_p2 = scmp.lt.s32.totalorder %s248_s20, %s244_s19 }
   0xc   :  { %38 = vperm.xlu0 %234, %v28_v8   ;;  %48 = vperm.xlu1 %235, %v30_v9   ;;  %p251_p3 = por %p250_p2, %p249_p1 }
   0xe   :  { %p252_p4 = pnand %p251_p3, %p245_p0 }
  0x10   :  { %163 = vperm.xlu0 %234, %v157_v10   ;;  %168 = vperm.xlu1 %235, %v158_v11  }
  0x14   :  { %173 = vperm.xlu0 %234, %v159_v12   ;;  %178 = vperm.xlu1 %235, %v160_v13  }
  0x87   :  { %v34_v14 = vpop.permute.xlu0 %33  ;;  %v44_v15 = vpop.permute.xlu1 %43 }
  0x8b   :  { %v39_v16 = vpop.permute.xlu0 %38  ;;  %v49_v22 = vpop.permute.xlu1 %48 }
  0x8f   :  { %v164_v26 = vpop.permute.xlu0 %163  ;;  %v169_v28 = vpop.permute.xlu1 %168 }
  0x93   :  { %v174_v34 = vpop.permute.xlu0 %173  ;;  %v179_v37 = vpop.permute.xlu1 %178 }
  0xd8   :  { %v226_v17 = vpop.f32.mrb[0].mxu0  ;;  %v229_v18 = vpop.f32.mrb[0].mxu1 }
  0xd9   :  { %v140_v19 = vadd.f32 %v226_v17, %v39_v16  ;;  %v134_v20 = vpop.f32.mrb[1].mxu0  ;;  %v144_v21 = vpop.f32.mrb[1].mxu1  ;;  %v150_v25 = vadd.f32 %v229_v18, %v49_v22 }
  0xda   :  { %v135_v23 = vadd.f32 %v134_v20, %v34_v14  ;;  %v145_v24 = vadd.f32 %v144_v21, %v44_v15 }
  0xdb   :  { %236 = vtanh.f32 %v140_v19 }
  0xdc   :  { %238 = vtanh.f32 %v135_v23 }
  0xdd   :  { %240 = vtanh.f32 %v145_v24 }
  0xde   :  { %242 = vtanh.f32 %v150_v25 }
  0xe5   :  { %v237_v27 = vpop.eup %236 }
  0xe6   :  { %v182_v29 = vmul.f32 %v237_v27, %v169_v28  ;;  %v239_v30 = vpop.eup %238 }
  0xe7   :  { %v241_v31 = vpop.eup %240  ;;  %v181_v32 = vmul.f32 %v239_v30, %v164_v26 }
  0xe8   :  { %v243_v33 = vpop.eup %242  ;;  %v183_v36 = vmul.f32 %v241_v31, %v174_v34 }
  0xe9   :  { %v185_v35 = vadd.f32 %v182_v29, %v181_v32  ;;  %v184_v38 = vmul.f32 %v243_v33, %v179_v37 }
  0xeb   :  { %v186_v39 = vadd.f32 %v185_v35, %v183_v36 }
  0xed   :  { %v187_v40 = vadd.f32 %v186_v39, %v184_v38 }
  0xef   :  { %v188_v41 = vrot.slane %v187_v40, 4 }
  0xf1   :  { %v189_v42 = vadd.f32 %v188_v41, %v187_v40 }
  0xf3   :  { %v190_v43 = vrot.slane %v189_v42, 2 }
  0xf5   :  { %v191_v44 = vadd.f32 %v190_v43, %v189_v42 }
  0xf7   :  { %v192_v45 = vrot.slane %v191_v44, 1 }
  0xf9   :  { %v193_v47 = vadd.f32 %v192_v45, %v191_v44 }
  0xfb   :  { %v196_v48 = vadd.f32 %v195_v46, %v193_v47 }
  0xfd   :  { %197 = vst [vmem:[#allocation3] sm:$0x1] %v196_v48 }
  0xfe   :  { %255 = shalt.err (!%p252_p4)
}
  0xff   :  { %s256_s23 = scalar_lea.hbm %s359_s5, 16 }
 0x100   :  { %p257_p5 = scmp.ne.s32.totalorder %s359_s5, %s256_s23  ;;  %p260_p6 = scmp.lt.u32.totalorder %s256_s23, %s359_s5 }
 0x102   :  { %p262_p7 = pnand %p260_p6, %p257_p5 }
 0x104   :  { %265 = shalt.err (!%p262_p7)
}
 0x105   :  { %207 = dma.vmem_to_hbm [thread:$0]  %s205_s18, 16, %s359_s5, [#allocation4]  }
 0x106   :  { %266 = dma.done.wait [#allocation4], 16  }
 0x107   :  { %267 = vsyncadd [#allocation4], 4294967280 }
 0x108   :  { %211 = vsyncpa [#allocation4], 1 }

</bundles_post_ra>
